<compile_context>
chip_gen: v7x
topology: tpu7x:2x2x1
jax: 0.10.0
libtpu: 0.0.40
codegen_flags: <defaults>
</compile_context>

<pallas_src>
import functools

import jax
import jax.numpy as jnp
import numpy as np
from jax import lax
from jax.experimental import pallas as pl
from jax.experimental.pallas import tpu as pltpu

LANES = 128


# ---------------------------------------------------------------------------
# Shared SE + sigmoid epilogue (runs once per image block)
# ---------------------------------------------------------------------------
def _se_sigmoid(mx, av, w1, w2):
    """mx, av: (Nb, C) f32; w1: (C, Cr); w2: (Cr, C). Returns (Nb, C) f32."""
    nb = mx.shape[0]
    v = jnp.concatenate([mx, av], axis=0)                            # (2*Nb, C)
    h = jnp.dot(v, w1, preferred_element_type=jnp.float32)           # (2*Nb, Cr)
    h = jnp.maximum(h, 0.0)                                          # ReLU
    z = jnp.dot(h, w2, preferred_element_type=jnp.float32)           # (2*Nb, C)
    z = z[:nb] + z[nb:]                                              # max_out + avg_out
    # Hand-written sigmoid (exp goes to the EUP slot); proven to lower cleanly.
    return 1.0 / (1.0 + jnp.exp(-z))


# ---------------------------------------------------------------------------
# Fast path: whole (Nb, C, HW) slab in one block, no reduction grid axis.
# ---------------------------------------------------------------------------
def _channel_attn_kernel_single(x_ref, w1_ref, w2_ref, o_ref, *, hw):
    xt = x_ref[...].astype(jnp.float32)                              # (Nb, C, HW)
    mx = jnp.max(xt, axis=-1)                                        # (Nb, C)
    av = jnp.sum(xt, axis=-1) * (1.0 / float(hw))                    # mean
    out = _se_sigmoid(mx, av, w1_ref[...], w2_ref[...])              # (Nb, C)
    o_ref[...] = out.reshape(o_ref.shape).astype(o_ref.dtype)


# ---------------------------------------------------------------------------
# Fallback path: large feature maps, spatial reduction tiling (Nb = 1).
# ---------------------------------------------------------------------------
def _channel_attn_kernel_tiled(x_ref, w1_ref, w2_ref, o_ref, max_sc, sum_sc,
                               *, hw, ts, num_s):
    """x_ref: (1, C, ts); scratch: (1, C, 128) lane-wide running max / sum."""
    s = pl.program_id(1)

    @pl.when(s == 0)
    def _():
        max_sc[...] = jnp.full_like(max_sc, -jnp.inf)
        sum_sc[...] = jnp.zeros_like(sum_sc)

    xt = x_ref[...].astype(jnp.float32)                              # (1, C, ts)

    def accumulate(xm, xs):
        # Elementwise (VPU) accumulation into 128-lane-wide scratch; no
        # cross-lane (XLU) work here -- co-issues with the next tile's DMA.
        acc_max = max_sc[...]
        acc_sum = sum_sc[...]
        for k in range(ts // LANES):
            sl = slice(k * LANES, (k + 1) * LANES)
            acc_max = jnp.maximum(acc_max, xm[:, :, sl])
            acc_sum = acc_sum + xs[:, :, sl]
        max_sc[...] = acc_max
        sum_sc[...] = acc_sum

    tail = hw % ts
    if tail == 0:
        # No masking needed anywhere (decided at trace time).
        accumulate(xt, xt)
    else:
        @pl.when(s < num_s - 1)
        def _():
            accumulate(xt, xt)

        @pl.when(s == num_s - 1)
        def _():
            # Tail mask only on the last spatial tile; (1, 1, ts) iota
            # broadcasts over channels.
            lane = lax.broadcasted_iota(jnp.int32, (1, 1, ts), 2)
            valid = ((num_s - 1) * ts + lane) < hw
            accumulate(jnp.where(valid, xt, -jnp.inf),
                       jnp.where(valid, xt, 0.0))

    @pl.when(s == num_s - 1)
    def _():
        # Single cross-lane reduce per image, then the fused SE MLP + sigmoid.
        mx = jnp.max(max_sc[...], axis=-1)                           # (1, C)
        av = jnp.sum(sum_sc[...], axis=-1) * (1.0 / float(hw))
        out = _se_sigmoid(mx, av, w1_ref[...], w2_ref[...])          # (1, C)
        o_ref[...] = out.reshape(o_ref.shape).astype(o_ref.dtype)


# ---------------------------------------------------------------------------
# pallas_call wrapper
# ---------------------------------------------------------------------------
def channel_attention(x_nchw, w1_oihw, w2_oihw, *, input_dtype=None,
                      max_block_bytes=4 * 1024 * 1024):
    """ChannelAttention forward.

    x: (N, C, H, W).  w1: (C//r, C, 1, 1).  w2: (C, C//r, 1, 1).
    Returns (N, C, 1, 1) float32.

    input_dtype=jnp.bfloat16 halves HBM traffic (memory-bound kernel) at the
    cost of bf16 rounding of the inputs (max stays exact, mean picks up ~1e-3
    relative error); default None keeps the f32 reference semantics.
    """
    N, C, H, W = x_nchw.shape
    Cr = w1_oihw.shape[0]
    HW = H * W

    # Free reshape (spatial already contiguous in NCHW) -> spatial on lanes.
    x_flat = x_nchw.reshape(N, C, HW)
    if input_dtype is not None and x_flat.dtype != input_dtype:
        x_flat = x_flat.astype(input_dtype)

    # 1x1 conv weights (O, I, 1, 1) -> matmul form.
    w1 = jnp.transpose(w1_oihw[:, :, 0, 0], (1, 0)).astype(jnp.float32)   # (C, Cr)
    w2 = jnp.transpose(w2_oihw[:, :, 0, 0], (1, 0)).astype(jnp.float32)   # (Cr, C)

    itemsize = jnp.dtype(x_flat.dtype).itemsize
    per_image_bytes = C * HW * itemsize

    if per_image_bytes <= max_block_bytes:
        # --------------------------------------------------------------
        # Fast path: fold as many batch images as fit into one block.
        # (Nb divides N, so no partial batch blocks / no masking at all.)
        # --------------------------------------------------------------
        cap = max(1, max_block_bytes // per_image_bytes)
        nb = max(d for d in range(1, N + 1) if N % d == 0 and d <= cap)
        kernel = functools.partial(_channel_attn_kernel_single, hw=HW)
        out = pl.pallas_call(
            kernel,
            out_shape=jax.ShapeDtypeStruct((N, 1, C), jnp.float32),
            grid_spec=pltpu.PrefetchScalarGridSpec(
                num_scalar_prefetch=0,
                grid=(N // nb,),
                in_specs=[
                    pl.BlockSpec((nb, C, HW), lambda n: (n, 0, 0)),
                    pl.BlockSpec((C, Cr), lambda n: (0, 0)),
                    pl.BlockSpec((Cr, C), lambda n: (0, 0)),
                ],
                out_specs=pl.BlockSpec((nb, 1, C), lambda n: (n, 0, 0)),
            ),
            compiler_params=pltpu.CompilerParams(
                dimension_semantics=("parallel",)),
        )(x_flat, w1, w2)
    else:
        # --------------------------------------------------------------
        # Fallback: spatial reduction tiling for large feature maps.
        # --------------------------------------------------------------
        ts = max(LANES, (max_block_bytes // (C * itemsize)) // LANES * LANES)
        ts = min(ts, pl.cdiv(HW, LANES) * LANES)
        num_s = pl.cdiv(HW, ts)
        kernel = functools.partial(_channel_attn_kernel_tiled,
                                   hw=HW, ts=ts, num_s=num_s)
        out = pl.pallas_call(
            kernel,
            out_shape=jax.ShapeDtypeStruct((N, 1, C), jnp.float32),
            grid_spec=pltpu.PrefetchScalarGridSpec(
                num_scalar_prefetch=0,
                grid=(N, num_s),
                in_specs=[
                    pl.BlockSpec((1, C, ts), lambda n, s: (n, 0, s)),
                    pl.BlockSpec((C, Cr), lambda n, s: (0, 0)),
                    pl.BlockSpec((Cr, C), lambda n, s: (0, 0)),
                ],
                out_specs=pl.BlockSpec((1, 1, C), lambda n, s: (n, 0, 0)),
                scratch_shapes=[
                    pltpu.VMEM((1, C, LANES), jnp.float32),   # running max (lane-wide)
                    pltpu.VMEM((1, C, LANES), jnp.float32),   # running sum (lane-wide)
                ],
            ),
            compiler_params=pltpu.CompilerParams(
                dimension_semantics=("parallel", "arbitrary")),
        )(x_flat, w1, w2)

    return out.reshape(N, C, 1, 1)


# ---------------------------------------------------------------------------
# Plain-JAX reference (matches the PyTorch forward)
# ---------------------------------------------------------------------------
def reference_forward(x, w1_oihw, w2_oihw):
    mx = jnp.max(x, axis=(2, 3), keepdims=True)     # AdaptiveMaxPool2d(1)
    av = jnp.mean(x, axis=(2, 3), keepdims=True)    # AdaptiveAvgPool2d(1)

    def se(v):
        h = jnp.einsum("nchw,oc->nohw", v, w1_oihw[:, :, 0, 0])
        h = jax.nn.relu(h)
        return jnp.einsum("nchw,oc->nohw", h, w2_oihw[:, :, 0, 0])

    return jax.nn.sigmoid(se(mx) + se(av))


# ---------------------------------------------------------------------------
if __name__ == "__main__":
    key = jax.random.PRNGKey(0)
    kx, k1, k2 = jax.random.split(key, 3)

    N, C, H, W = 2, 64, 16, 16
    reduction = 16
    Cr = C // reduction                      # 4

    x = jax.random.normal(kx, (N, C, H, W), jnp.float32)
    # PyTorch Conv2d weight layout: (out, in, 1, 1), bias=False
    w1 = (C ** -0.5) * jax.random.normal(k1, (Cr, C, 1, 1), jnp.float32)
    w2 = (Cr ** -0.5) * jax.random.normal(k2, (C, Cr, 1, 1), jnp.float32)

    ref = reference_forward(x, w1, w2)

    # 1) Default fast path: single fused block, batch folded, f32 input.
    out = jax.block_until_ready(jax.jit(channel_attention)(x, w1, w2))
    assert out.shape == (N, C, 1, 1)
    np.testing.assert_allclose(np.asarray(out), np.asarray(ref),
                               rtol=1e-4, atol=1e-5)

    # 2) Spatially tiled fallback path, forced via a tiny block budget, with a
    #    non-multiple-of-128 spatial extent to exercise the tail mask
    #    (HW = 17*17 = 289 -> ts = 128, 3 reduction steps, tail = 33).
    x_t = jax.random.normal(kx, (N, C, 17, 17), jnp.float32)
    ref_t = reference_forward(x_t, w1, w2)
    fwd_t = jax.jit(functools.partial(channel_attention,
                                      max_block_bytes=C * 128 * 4))
    out_t = jax.block_until_ready(fwd_t(x_t, w1, w2))
    np.testing.assert_allclose(np.asarray(out_t), np.asarray(ref_t),
                               rtol=1e-4, atol=1e-5)

    # 3) bf16-input fast path (halves HBM traffic); looser tolerance since the
    #    mean path picks up bf16 input rounding.
    fwd_bf = jax.jit(functools.partial(channel_attention,
                                       input_dtype=jnp.bfloat16))
    out_bf = jax.block_until_ready(fwd_bf(x, w1, w2))
    np.testing.assert_allclose(np.asarray(out_bf), np.asarray(ref),
                               rtol=2e-2, atol=2e-2)

    print("KERNEL_OK")
</pallas_src>

<mosaic_0001>
module attributes {stable_mosaic.version = 11 : i64} {
  func.func @_channel_attn_kernel_single(%arg0: i32, %arg1: memref<2x64x256xf32, #tpu.memory_space<vmem>>, %arg2: memref<64x4xf32, #tpu.memory_space<vmem>>, %arg3: memref<4x64xf32, #tpu.memory_space<vmem>>, %arg4: memref<2x1x64xf32, #tpu.memory_space<vmem>>) attributes {dimension_semantics = [#tpu.dimension_semantics<parallel>], iteration_bounds = array<i64: 1>, scalar_prefetch = 0 : i64, scratch_operands = 0 : i64, tpu.core_type = #tpu.core_type<tc>, window_params = [{transform_indices = @transform_0, window_bounds = array<i64: 2, 64, 256>}, {pipeline_mode = #tpu.pipeline_mode<synchronous>, transform_indices = @transform_1, window_bounds = array<i64: 64, 4>}, {pipeline_mode = #tpu.pipeline_mode<synchronous>, transform_indices = @transform_2, window_bounds = array<i64: 4, 64>}, {transform_indices = @transform_3, window_bounds = array<i64: 2, 1, 64>}]} {
    %c0 = arith.constant 0 : index
    %c0_0 = arith.constant 0 : index
    %c0_1 = arith.constant 0 : index
    %0 = vector.load %arg1[%c0, %c0_0, %c0_1] : memref<2x64x256xf32, #tpu.memory_space<vmem>>, vector<2x64x256xf32>
    %cst = arith.constant dense<0xFF800000> : vector<2x64xf32>
    %1 = vector.multi_reduction <maximumf>, %0, %cst [2] : vector<2x64x256xf32> to vector<2x64xf32>
    %cst_2 = arith.constant dense<0.000000e+00> : vector<2x64xf32>
    %2 = vector.multi_reduction <add>, %0, %cst_2 [2] : vector<2x64x256xf32> to vector<2x64xf32>
    %cst_3 = arith.constant 3.906250e-03 : f32
    %3 = vector.broadcast %cst_3 : f32 to vector<2x64xf32>
    %4 = arith.mulf %2, %3 : vector<2x64xf32>
    %c0_4 = arith.constant 0 : index
    %c0_5 = arith.constant 0 : index
    %5 = vector.load %arg2[%c0_4, %c0_5] : memref<64x4xf32, #tpu.memory_space<vmem>>, vector<64x4xf32>
    %c0_6 = arith.constant 0 : index
    %c0_7 = arith.constant 0 : index
    %6 = vector.load %arg3[%c0_6, %c0_7] : memref<4x64xf32, #tpu.memory_space<vmem>>, vector<4x64xf32>
    %7 = tpu.concatenate %1, %4 in 0 : vector<2x64xf32>, vector<2x64xf32> -> vector<4x64xf32>
    %cst_8 = arith.constant dense<0.000000e+00> : vector<4x4xf32>
    %8 = tpu.matmul %7, %5, %cst_8 {dimension_numbers = #tpu.dot_dimension_numbers<[1], [0], [0], [1], [0, 0, 1, 1], [], []>} : vector<4x64xf32>, vector<64x4xf32>, vector<4x4xf32> -> vector<4x4xf32>
    %cst_9 = arith.constant 0.000000e+00 : f32
    %9 = vector.broadcast %cst_9 : f32 to vector<4x4xf32>
    %10 = arith.maximumf %8, %9 : vector<4x4xf32>
    %cst_10 = arith.constant dense<0.000000e+00> : vector<4x64xf32>
    %11 = tpu.matmul %10, %6, %cst_10 {dimension_numbers = #tpu.dot_dimension_numbers<[1], [0], [0], [1], [0, 0, 1, 1], [], []>} : vector<4x4xf32>, vector<4x64xf32>, vector<4x64xf32> -> vector<4x64xf32>
    %12 = vector.extract_strided_slice %11 {offsets = [0, 0], sizes = [2, 64], strides = [1, 1]} : vector<4x64xf32> to vector<2x64xf32>
    %13 = vector.extract_strided_slice %11 {offsets = [2, 0], sizes = [2, 64], strides = [1, 1]} : vector<4x64xf32> to vector<2x64xf32>
    %14 = arith.addf %12, %13 : vector<2x64xf32>
    %cst_11 = arith.constant 0.000000e+00 : f32
    %15 = vector.broadcast %cst_11 : f32 to vector<2x64xf32>
    %16 = arith.subf %15, %14 : vector<2x64xf32>
    %17 = math.exp %16 : vector<2x64xf32>
    %cst_12 = arith.constant 1.000000e+00 : f32
    %18 = vector.broadcast %cst_12 : f32 to vector<2x64xf32>
    %19 = arith.addf %18, %17 : vector<2x64xf32>
    %cst_13 = arith.constant 1.000000e+00 : f32
    %20 = vector.broadcast %cst_13 : f32 to vector<2x64xf32>
    %21 = arith.divf %20, %19 : vector<2x64xf32>
    %22 = vector.shape_cast %21 : vector<2x64xf32> to vector<2x1x64xf32>
    %c0_14 = arith.constant 0 : index
    %c0_15 = arith.constant 0 : index
    %c0_16 = arith.constant 0 : index
    %23 = vector.load %arg4[%c0_14, %c0_15, %c0_16] : memref<2x1x64xf32, #tpu.memory_space<vmem>>, vector<2x1x64xf32>
    tpu.vector_store %arg4[%c0_14, %c0_15, %c0_16], %22 {strides = array<i32>} : memref<2x1x64xf32, #tpu.memory_space<vmem>>, vector<2x1x64xf32>,
    return
  }
  func.func @transform_0(%arg0: i32) -> (i32, i32, i32) {
    %c0_i32 = arith.constant 0 : i32
    %c0_i32_0 = arith.constant 0 : i32
    %c0_i32_1 = arith.constant 0 : i32
    return %arg0, %c0_i32, %c0_i32_0 : i32, i32, i32
  }
  func.func @transform_1(%arg0: i32) -> (i32, i32) {
    %c0_i32 = arith.constant 0 : i32
    %c0_i32_0 = arith.constant 0 : i32
    %c0_i32_1 = arith.constant 0 : i32
    return %c0_i32, %c0_i32_0 : i32, i32
  }
  func.func @transform_2(%arg0: i32) -> (i32, i32) {
    %c0_i32 = arith.constant 0 : i32
    %c0_i32_0 = arith.constant 0 : i32
    %c0_i32_1 = arith.constant 0 : i32
    return %c0_i32, %c0_i32_0 : i32, i32
  }
  func.func @transform_3(%arg0: i32) -> (i32, i32, i32) {
    %c0_i32 = arith.constant 0 : i32
    %c0_i32_0 = arith.constant 0 : i32
    %c0_i32_1 = arith.constant 0 : i32
    return %arg0, %c0_i32, %c0_i32_0 : i32, i32, i32
  }
}

</mosaic_0001>

<bundles_post_ra>
// kernel: channel_attention.1
= control target key start
LH: loop header
LB: loop body
LE: loop exit
PB: predicated region body
PF: predicated region fallthrough
CT: control target
= control target key end

     0   :  { %s941_s0 = inlined_call_operand.vmem [shape: f32[2,64,256], index: 0, kind: input, shape index: {}]   ;;  %s942_s1 = inlined_call_operand.vmem [shape: f32[64,4], index: 1, kind: input, shape index: {}]   ;;  %s943_s2 = inlined_call_operand.vmem [shape: f32[4,64], index: 2, kind: input, shape index: {}]   ;;  %s944_s3 = inlined_call_operand.hbm [shape: f32[2,1,64], index: 3, kind: output, shape index: {}]  }
   0x1   :  { %v31_v0 = vld [vmem:[%s941_s0 + $0x80] sm:$0xff]  ;;  %v32_v1 = vld [vmem:[%s941_s0 + $0x88] sm:$0xff]  ;;  %v33_v5 = vld [vmem:[%s941_s0 + $0x90] sm:$0xff] }
   0x2   :  { %v15_v2 = vld [vmem:[%s941_s0] sm:$0xff]  ;;  %v119_v3 = vadd.f32 %v32_v1, %v31_v0  ;;  %v16_v4 = vld [vmem:[%s941_s0 + $0x8] sm:$0xff]  ;;  %v34_v6 = vld [vmem:[%s941_s0 + $0x98] sm:$0xff] }
   0x3   :  { %v95_v7 = vadd.f32 %v16_v4, %v15_v2  ;;  %v17_v8 = vld [vmem:[%s941_s0 + $0x10] sm:$0xff]  ;;  %v18_v9 = vld [vmem:[%s941_s0 + $0x18] sm:$0xff]  ;;  %v122_v10 = vadd.f32 %v34_v6, %v33_v5  ;;  %v35_v12 = vld [vmem:[%s941_s0 + $0xa0] sm:$0xff] }
   0x4   :  { %120 = vadd.xlane.f32.xlu1 %v119_v3  ;;  %v98_v11 = vadd.f32 %v18_v9, %v17_v8  ;;  %v36_v13 = vld [vmem:[%s941_s0 + $0xa8] sm:$0xff]  ;;  %v19_v14 = vld [vmem:[%s941_s0 + $0x20] sm:$0xff] }
   0x5   :  { %96 = vadd.xlane.f32.xlu0 %v95_v7  ;;  %v20_v15 = vld [vmem:[%s941_s0 + $0x28] sm:$0xff]  ;;  %v125_v16 = vadd.f32 %v36_v13, %v35_v12 }
   0x6   :  { %v101_v17 = vadd.f32 %v20_v15, %v19_v14 }
   0x8   :  { %123 = vadd.xlane.f32.xlu1 %v122_v10 }
   0x9   :  { %99 = vadd.xlane.f32.xlu0 %v98_v11 }
   0xa   :  { %8 = vsyncpa [#allocation3], 0  ;;  %v50_v18 = vmax.f32 %v17_v8, %v18_v9  ;;  %v47_v19 = vmax.f32 %v15_v2, %v16_v4  ;;  %v74_v20 = vmax.f32 %v33_v5, %v34_v6  ;;  %v71_v21 = vmax.f32 %v31_v0, %v32_v1  ;;  %v37_v22 = vld [vmem:[%s941_s0 + $0xb0] sm:$0xff]  ;;  %v38_v23 = vld [vmem:[%s941_s0 + $0xb8] sm:$0xff] }
   0xb   :  { %v21_v24 = vld [vmem:[%s941_s0 + $0x30] sm:$0xff]  ;;  %v22_v25 = vld [vmem:[%s941_s0 + $0x38] sm:$0xff]  ;;  %v128_v26 = vadd.f32 %v38_v23, %v37_v22  ;;  %v77_v28 = vmax.f32 %v35_v12, %v36_v13  ;;  %v53_v29 = vmax.f32 %v19_v14, %v20_v15  ;;  %v39_v30 = vld [vmem:[%s941_s0 + $0xc0] sm:$0xff]  ;;  %v80_v36 = vmax.f32 %v37_v22, %v38_v23 }
   0xc   :  { %126 = vadd.xlane.f32.xlu1 %v125_v16  ;;  %v104_v27 = vadd.f32 %v22_v25, %v21_v24  ;;  %v40_v31 = vld [vmem:[%s941_s0 + $0xc8] sm:$0xff]  ;;  %v23_v32 = vld [vmem:[%s941_s0 + $0x40] sm:$0xff]  ;;  %v56_v37 = vmax.f32 %v21_v24, %v22_v25  ;;  %v41_v38 = vld [vmem:[%s941_s0 + $0xd0] sm:$0xff]  ;;  %v672_v3 = vmov 0.0|0.0   ;;  %vm673_vm0 = vmmov 0  }
   0xd   :  { %102 = vadd.xlane.f32.xlu0 %v101_v17  ;;  %v24_v33 = vld [vmem:[%s941_s0 + $0x48] sm:$0xff]  ;;  %v131_v34 = vadd.f32 %v40_v31, %v39_v30  ;;  %v42_v39 = vld [vmem:[%s941_s0 + $0xd8] sm:$0xff]  ;;  %v25_v40 = vld [vmem:[%s941_s0 + $0x50] sm:$0xff]  ;;  %v83_v44 = vmax.f32 %v39_v30, %v40_v31  ;;  %625 = vmatprep.subr.bf16.mxu0 %v672_v3  ;;  %v674_v13 = vmov 0.0   ;;  %v184_v30 = vlaneseq }
   0xe   :  { %v107_v35 = vadd.f32 %v24_v33, %v23_v32  ;;  %v26_v41 = vld [vmem:[%s941_s0 + $0x58] sm:$0xff]  ;;  %v134_v42 = vadd.f32 %v42_v39, %v41_v38  ;;  %v59_v45 = vmax.f32 %v23_v32, %v24_v33  ;;  %v43_v46 = vld [vmem:[%s941_s0 + $0xe0] sm:$0xff]  ;;  %v44_v47 = vld [vmem:[%s941_s0 + $0xe8] sm:$0xff]  ;;  %v86_v52 = vmax.f32 %v41_v38, %v42_v39  ;;  %617 = vmatprep.mubr.msk.f32.mxu0 %vm673_vm0, %v674_v13 }
   0xf   :  { %v110_v43 = vadd.f32 %v26_v41, %v25_v40  ;;  %v27_v48 = vld [vmem:[%s941_s0 + $0x60] sm:$0xff]  ;;  %v28_v49 = vld [vmem:[%s941_s0 + $0x68] sm:$0xff]  ;;  %v137_v50 = vadd.f32 %v44_v47, %v43_v46  ;;  %v62_v53 = vmax.f32 %v25_v40, %v26_v41  ;;  %v45_v54 = vld [vmem:[%s941_s0 + $0xf0] sm:$0xff]  ;;  %v89_v60 = vmax.f32 %v43_v46, %v44_v47  ;;  %620 = vmatprep.subr.mxu1 %v674_v13 }
  0x10   :  { %51 = vmax.xlane.f32.xlu1 %v50_v18  ;;  %v113_v51 = vadd.f32 %v28_v49, %v27_v48  ;;  %v46_v55 = vld [vmem:[%s941_s0 + $0xf8] sm:$0xff]  ;;  %v29_v56 = vld [vmem:[%s941_s0 + $0x70] sm:$0xff]  ;;  %v65_v61 = vmax.f32 %v27_v48, %v28_v49  ;;  %v159_v0 = vld [vmem:[%s942_s1] sm:$0xff]  ;;  %622 = vmatprep.mubr.msk.f32.mxu1 %vm673_vm0, %v674_v13  ;;  %v185_v33 = vand.u32 127, %v184_v30  ;;  %vm195_vm1 = vcmask 130112  }
  0x11   :  { %48 = vmax.xlane.f32.xlu0 %v47_v19  ;;  %v30_v57 = vld [vmem:[%s941_s0 + $0x78] sm:$0xff]  ;;  %v140_v58 = vadd.f32 %v46_v55, %v45_v54  ;;  %v92_v62 = vmax.f32 %v45_v54, %v46_v55  ;;  %v160_v1 = vld [vmem:[%s942_s1 + $0x8] sm:$0xff]  ;;  %v161_v4 = vld [vmem:[%s942_s1 + $0x10] sm:$0xff]  ;;  %vm202_vm2 = vcmask 195712   ;;  %vm209_vm3 = vcmask 261312  }
  0x12   :  { %v116_v59 = vadd.f32 %v30_v57, %v29_v56  ;;  %v68_v63 = vmax.f32 %v29_v56, %v30_v57  ;;  %v626_v2 = vpack.c.bf16 %v160_v1, %v159_v0  ;;  %v162_v5 = vld [vmem:[%s942_s1 + $0x18] sm:$0xff]  ;;  %v163_v7 = vld [vmem:[%s942_s1 + $0x20] sm:$0xff]  ;;  %v164_v8 = vld [vmem:[%s942_s1 + $0x28] sm:$0xff]  ;;  %v204_v39 = vadd.s32 4294967272, %v185_v33 }
  0x13   :  { %v629_v6 = vpack.c.bf16 %v162_v5, %v161_v4  ;;  %v632_v9 = vpack.c.bf16 %v164_v8, %v163_v7  ;;  %v165_v10 = vld [vmem:[%s942_s1 + $0x30] sm:$0xff]  ;;  %v166_v11 = vld [vmem:[%s942_s1 + $0x38] sm:$0xff]  ;;  %v218_v48 = vadd.s32 4294967256, %v185_v33  ;;  %v225_v49 = vadd.s32 4294967248, %v185_v33 }
  0x14   :  { %75 = vmax.xlane.f32.xlu1 %v74_v20  ;;  %627 = vmatpush3.bf16.msra.mxu0 %v626_v2  ;;  %v635_v12 = vpack.c.bf16 %v166_v11, %v165_v10  ;;  %vm216_vm4 = vcmask 326912   ;;  %vm223_vm5 = vcmask 392512   ;;  %vm230_vm6 = vcmask 458112  }
  0x15   :  { %72 = vmax.xlane.f32.xlu0 %v71_v21  ;;  %628 = vmatprep.subr.bf16.mxu0 %v672_v3  ;;  %vm237_vm7 = vcmask 523712   ;;  %vm278_vm8 = vcmask 1041409   ;;  %vm375_vm9 = vcmask 1043459   ;;  %vm378_vm10 = vcmask 1041408  }
  0x16   :  { %vm380_vm11 = vcmask 523264   ;;  %vm459_vm12 = vcmask 1043456   ;;  %vm455_vm13 = vcmask 31744   ;;  %vm568_vm14 = vcmask 516096  }
  0x18   :  { %129 = vadd.xlane.f32.xlu1 %v128_v26  ;;  %630 = vmatpush3.bf16.msra.mxu0 %v629_v6 }
  0x19   :  { %105 = vadd.xlane.f32.xlu0 %v104_v27  ;;  %631 = vmatprep.subr.bf16.mxu0 %v672_v3 }
  0x1c   :  { %78 = vmax.xlane.f32.xlu1 %v77_v28  ;;  %633 = vmatpush3.bf16.msra.mxu0 %v632_v9 }
  0x1d   :  { %54 = vmax.xlane.f32.xlu0 %v53_v29  ;;  %634 = vmatprep.subr.bf16.mxu0 %v672_v3 }
  0x20   :  { %132 = vadd.xlane.f32.xlu1 %v131_v34  ;;  %636 = vmatpush3.bf16.msra.mxu0 %v635_v12 }
  0x21   :  { %108 = vadd.xlane.f32.xlu0 %v107_v35  ;;  %v835_v35 = vshrl.u32 %v184_v30, 7 }
  0x23   :  { %v188_v41 = vsub.s32 %v185_v33, %v835_v35  ;;  %v847_v54 = vsub.s32 %v204_v39, %v835_v35  ;;  %v856_v0 = vsub.s32 %v225_v49, %v835_v35 }
  0x24   :  { %81 = vmax.xlane.f32.xlu1 %v80_v36  ;;  %v190_v36 = vadd.s32 4294967288, %v185_v33 }
  0x25   :  { %57 = vmax.xlane.f32.xlu0 %v56_v37  ;;  %v197_v37 = vadd.s32 4294967280, %v185_v33 }
  0x28   :  { %135 = vadd.xlane.f32.xlu1 %v134_v42  ;;  %v193_v42 = vsub.s32 %v190_v36, %v835_v35 }
  0x29   :  { %111 = vadd.xlane.f32.xlu0 %v110_v43  ;;  %v842_v43 = vsub.s32 %v197_v37, %v835_v35 }
  0x2c   :  { %84 = vmax.xlane.f32.xlu1 %v83_v44  ;;  %v211_v44 = vadd.s32 4294967264, %v185_v33 }
  0x2d   :  { %60 = vmax.xlane.f32.xlu0 %v59_v45 }
  0x30   :  { %138 = vadd.xlane.f32.xlu1 %v137_v50 }
  0x31   :  { %114 = vadd.xlane.f32.xlu0 %v113_v51 }
  0x34   :  { %87 = vmax.xlane.f32.xlu1 %v86_v52 }
  0x35   :  { %63 = vmax.xlane.f32.xlu0 %v62_v53 }
  0x38   :  { %141 = vadd.xlane.f32.xlu1 %v140_v58  ;;  %v850_v58 = vsub.s32 %v211_v44, %v835_v35 }
  0x39   :  { %117 = vadd.xlane.f32.xlu0 %v116_v59 }
  0x3c   :  { %90 = vmax.xlane.f32.xlu1 %v89_v60  ;;  %v232_v60 = vadd.s32 4294967240, %v185_v33 }
  0x3d   :  { %66 = vmax.xlane.f32.xlu0 %v65_v61 }
  0x40   :  { %93 = vmax.xlane.f32.xlu1 %v92_v62 }
  0x41   :  { %69 = vmax.xlane.f32.xlu0 %v68_v63  ;;  %v853_v63 = vsub.s32 %v218_v48, %v835_v35 }
  0x91   :  { %v121_v14 = vpop.xlane.xlu1 %120 }
  0x92   :  { %v97_v15 = vpop.xlane.xlu0 %96  ;;  %v151_v50 = vmul.f32 0.00390625, %v121_v14  ;;  %v867_v14 = vsub.s32 %v232_v60, %v835_v35 }
  0x93   :  { %v143_v51 = vmul.f32 0.00390625, %v97_v15 }
  0x94   :  { %v339_v1 = vrot.slane %v151_v50, %v188_v41 }
  0x95   :  { %v124_v16 = vpop.xlane.xlu1 %123  ;;  %v300_v2 = vrot.slane %v143_v51, %v188_v41 }
  0x96   :  { %v100_v17 = vpop.xlane.xlu0 %99  ;;  %v152_v46 = vmul.f32 0.00390625, %v124_v16 }
  0x97   :  { %v144_v47 = vmul.f32 0.00390625, %v100_v17 }
  0x98   :  { %v343_v61 = vrot.slane %v152_v46, %v193_v42 }
  0x99   :  { %v127_v18 = vpop.xlane.xlu1 %126  ;;  %v304_v62 = vrot.slane %v144_v47, %v193_v42 }
  0x9a   :  { %v103_v19 = vpop.xlane.xlu0 %102  ;;  %v153_v52 = vmul.f32 0.00390625, %v127_v18  ;;  %v344_v15 = vsel %vm195_vm1, %v343_v61, %v339_v1 }
  0x9b   :  { %v145_v53 = vmul.f32 0.00390625, %v103_v19  ;;  %v305_v16 = vsel %vm195_vm1, %v304_v62, %v300_v2 }
  0x9c   :  { %v348_v3 = vrot.slane %v153_v52, %v842_v43 }
  0x9d   :  { %v819_v20 = vpop.xlane.xlu1 %51  ;;  %v309_v4 = vrot.slane %v145_v53, %v842_v43 }
  0x9e   :  { %v821_v21 = vpop.xlane.xlu0 %48  ;;  %v194_v5 = vrot.slane %v819_v20, %v193_v42  ;;  %v349_v19 = vsel %vm202_vm2, %v348_v3, %v344_v15 }
  0x9f   :  { %v189_v6 = vrot.slane %v821_v21, %v188_v41  ;;  %v310_v20 = vsel %vm202_vm2, %v309_v4, %v305_v16 }
  0xa1   :  { %v823_v22 = vpop.xlane.xlu1 %75 }
  0xa2   :  { %v825_v23 = vpop.xlane.xlu0 %72  ;;  %v246_v7 = vrot.slane %v823_v22, %v193_v42 }
  0xa3   :  { %v242_v8 = vrot.slane %v825_v23, %v188_v41  ;;  %v196_v23 = vsel %vm195_vm1, %v194_v5, %v189_v6 }
  0xa5   :  { %v130_v24 = vpop.xlane.xlu1 %129 }
  0xa6   :  { %v106_v25 = vpop.xlane.xlu0 %105  ;;  %v154_v56 = vmul.f32 0.00390625, %v130_v24  ;;  %v247_v24 = vsel %vm195_vm1, %v246_v7, %v242_v8 }
  0xa7   :  { %v146_v57 = vmul.f32 0.00390625, %v106_v25 }
  0xa8   :  { %v353_v10 = vrot.slane %v154_v56, %v847_v54 }
  0xa9   :  { %v827_v26 = vpop.xlane.xlu1 %78  ;;  %v314_v11 = vrot.slane %v146_v57, %v847_v54 }
  0xaa   :  { %v829_v27 = vpop.xlane.xlu0 %54  ;;  %v251_v17 = vrot.slane %v827_v26, %v842_v43  ;;  %v354_v33 = vsel %vm209_vm3, %v353_v10, %v349_v19 }
  0xab   :  { %v201_v21 = vrot.slane %v829_v27, %v842_v43  ;;  %v315_v26 = vsel %vm209_vm3, %v314_v11, %v310_v20 }
  0xac   :  { %v252_v39 = vsel %vm202_vm2, %v251_v17, %v247_v24  ;;  %v167_v17 = vld [vmem:[%s943_s2] sm:$0xf]  ;;  %s676_s2 = smov [#allocation2]  }
  0xad   :  { %v133_v28 = vpop.xlane.xlu1 %132  ;;  %621 = vmatpush3.msk.msra.mxu1 %vm459_vm12, %v167_v17  ;;  %s576_s11 = sshll.u32 %s676_s2, 4  ;;  %s577_s11 = int_to_ptr.vmem [resolvable:$true] %s576_s11 }
  0xae   :  { %v109_v29 = vpop.xlane.xlu0 %108  ;;  %v155_v12 = vmul.f32 0.00390625, %v133_v28  ;;  %s648_s12 = scalar_lea.vmem %s577_s11, 32  ;;  %p653_p1 = scmp.lt.s32.totalorder %s577_s11, %s577_s11 }
  0xaf   :  { %v147_v18 = vmul.f32 0.00390625, %v109_v29  ;;  %p649_p0 = scmp.ne.s32.totalorder %s577_s11, %s648_s12  ;;  %p654_p2 = scmp.lt.s32.totalorder %s648_s12, %s648_s12 }
  0xb0   :  { %v358_v29 = vrot.slane %v155_v12, %v850_v58 }
  0xb1   :  { %v831_v31 = vpop.xlane.xlu1 %81  ;;  %v319_v27 = vrot.slane %v147_v18, %v850_v58  ;;  %p655_p3 = por %p654_p2, %p653_p1 }
  0xb2   :  { %v833_v32 = vpop.xlane.xlu0 %57  ;;  %v256_v42 = vrot.slane %v831_v31, %v847_v54  ;;  %v359_v51 = vsel %vm216_vm4, %v358_v29, %v354_v33  ;;  %v675_v33 = vmov 1966171168  }
  0xb3   :  { %v208_v43 = vrot.slane %v833_v32, %v847_v54  ;;  %v320_v54 = vsel %vm216_vm4, %v319_v27, %v315_v26  ;;  %v545_v26 = vunpack.c.l.s4 %v675_v33  ;;  %p656_p4 = pnand %p655_p3, %p649_p0 }
  0xb4   :  { %v257_v56 = vsel %vm209_vm3, %v256_v42, %v252_v39 }
  0xb5   :  { %v136_v34 = vpop.xlane.xlu1 %135  ;;  %v546_v29 = vunpack.c.0.s8 %v545_v26 }
  0xb6   :  { %v112_v38 = vpop.xlane.xlu0 %111  ;;  %v156_v22 = vmul.f32 0.00390625, %v136_v34 }
  0xb7   :  { %v148_v25 = vmul.f32 0.00390625, %v112_v38  ;;  %v203_v38 = vsel %vm202_vm2, %v201_v21, %v196_v23 }
  0xb8   :  { %v363_v44 = vrot.slane %v156_v22, %v853_v63  ;;  %v210_v57 = vsel %vm209_vm3, %v208_v43, %v203_v38 }
  0xb9   :  { %v837_v40 = vpop.xlane.xlu1 %84  ;;  %v324_v46 = vrot.slane %v148_v25, %v853_v63 }
  0xba   :  { %v844_v45 = vpop.xlane.xlu0 %60  ;;  %v261_v47 = vrot.slane %v837_v40, %v850_v58 }
  0xbb   :  { %v215_v48 = vrot.slane %v844_v45, %v850_v58  ;;  %v364_v58 = vsel %vm223_vm5, %v363_v44, %v359_v51  ;;  %v325_v60 = vsel %vm223_vm5, %v324_v46, %v320_v54 }
  0xbc   :  { %v262_v61 = vsel %vm216_vm4, %v261_v47, %v257_v56 }
  0xbd   :  { %v139_v55 = vpop.xlane.xlu1 %138  ;;  %v217_v62 = vsel %vm216_vm4, %v215_v48, %v210_v57 }
  0xbe   :  { %v115_v59 = vpop.xlane.xlu0 %114  ;;  %v157_v28 = vmul.f32 0.00390625, %v139_v55 }
  0xbf   :  { %v149_v36 = vmul.f32 0.00390625, %v115_v59 }
  0xc0   :  { %v368_v49 = vrot.slane %v157_v28, %v856_v0 }
  0xc1   :  { %v88_v9 = vpop.xlane.xlu1 %87  ;;  %v329_v31 = vrot.slane %v149_v36, %v856_v0  ;;  %v549_v36 = vsub.s32 %v546_v29, %v835_v35 }
  0xc2   :  { %v64_v13 = vpop.xlane.xlu0 %63  ;;  %v266_v52 = vrot.slane %v88_v9, %v853_v63 }
  0xc3   :  { %v222_v32 = vrot.slane %v64_v13, %v853_v63  ;;  %v369_v63 = vsel %vm230_vm6, %v368_v49, %v364_v58  ;;  %v330_v2 = vsel %vm230_vm6, %v329_v31, %v325_v60 }
  0xc4   :  { %v267_v3 = vsel %vm223_vm5, %v266_v52, %v262_v61 }
  0xc5   :  { %v142_v30 = vpop.xlane.xlu1 %141  ;;  %v224_v4 = vsel %vm223_vm5, %v222_v32, %v217_v62 }
  0xc6   :  { %v118_v37 = vpop.xlane.xlu0 %117  ;;  %v158_v34 = vmul.f32 0.00390625, %v142_v30 }
  0xc7   :  { %v150_v41 = vmul.f32 0.00390625, %v118_v37 }
  0xc8   :  { %v373_v55 = vrot.slane %v158_v34, %v867_v14 }
  0xc9   :  { %v91_v50 = vpop.xlane.xlu1 %90  ;;  %v334_v40 = vrot.slane %v150_v41, %v867_v14 }
  0xca   :  { %v67_v53 = vpop.xlane.xlu0 %66  ;;  %v271_v45 = vrot.slane %v91_v50, %v856_v0 }
  0xcb   :  { %v229_v59 = vrot.slane %v67_v53, %v856_v0  ;;  %v374_v0 = vsel %vm237_vm7, %v373_v55, %v369_v63  ;;  %v335_v7 = vsel %vm237_vm7, %v334_v40, %v330_v2 }
  0xcc   :  { %v272_v8 = vsel %vm230_vm6, %v271_v45, %v267_v3  ;;  %v376_v15 = vsel %vm375_vm9, %v374_v0, %v335_v7 }
  0xcd   :  { %v94_v1 = vpop.xlane.xlu1 %93  ;;  %v231_v10 = vsel %vm230_vm6, %v229_v59, %v224_v4 }
  0xce   :  { %v276_v5 = vrot.slane %v94_v1, %v867_v14  ;;  %v70_v6 = vpop.xlane.xlu0 %69 }
  0xcf   :  { %v236_v9 = vrot.slane %v70_v6, %v867_v14 }
  0xd0   :  { %v277_v11 = vsel %vm237_vm7, %v276_v5, %v272_v8 }
  0xd1   :  { %v238_v12 = vsel %vm237_vm7, %v236_v9, %v231_v10 }
  0xd2   :  { %v279_v13 = vsel %vm278_vm8, %v277_v11, %v238_v12 }
  0xd3   :  { %v379_v16 = vsel %vm378_vm10, %v279_v13, %v376_v15 }
  0xd4   :  { %618 = vmatmul.mubr.msk.f32.vlgmr.msra.gmra.mrb[0].mxu0 %vm380_vm11, %v379_v16 }
 0x1a7   :  { %v450_v14 = vpop.f32.mrb[0].mxu0 }
 0x1a8   :  { %v454_v18 = vmax.f32 %v450_v14, 0.0  ;;  %v619_v19 = vpop.f32.mrb[1].mxu0 }
 0x1aa   :  { %623 = vmatmul.mubr.msk.f32.vlgmr.msra.gmra.mrb[0].mxu1 %vm455_vm13, %v454_v18 }
 0x27d   :  { %v529_v20 = vpop.f32.mrb[0].mxu1 }
 0x27e   :  { %v534_v21 = vrot.slane %v529_v20, 2  ;;  %v624_v22 = vpop.f32.mrb[1].mxu1 }
 0x280   :  { %v536_v23 = vadd.f32 %v534_v21, %v529_v20 }
 0x282   :  { %v537_v24 = vsub.f32 0.0, %v536_v23 }
 0x284   :  { %v538_v25 = vmul.f32 1.442695, %v537_v24 }
 0x286   :  { %644 = vpow2.f32 %v538_v25 }
 0x290   :  { %v645_v28 = vpop.eup %644 }
 0x291   :  { %v540_v30 = vadd.f32 1.0, %v645_v28 }
 0x293   :  { %646 = vrcp.f32 %v540_v30 }
 0x29d   :  { %v647_v37 = vpop.eup %646 }
 0x29e   :  { %v550_v39 = vrot.slane %v647_v37, %v549_v36 }
 0x2a0   :  { %v551_v27 = vcombine.high %v550_v39, %v550_v39  ;;  %v558_v34 = vrot.slane %v550_v39, %v549_v36 }
 0x2a2   :  { %v565_v41 = vrot.slane %v551_v27, %v549_v36  ;;  %569 = vst.msk [vmem:[#allocation2] sm:$0x1] %vm568_vm14, %v558_v34 }
 0x2a4   :  { %570 = vst.msk [vmem:[#allocation2 + $0x1] sm:$0x1] %vm568_vm14, %v565_v41 }
 0x2a5   :  { %659 = shalt.err (!%p656_p4)
}
 0x2a6   :  { %s660_s15 = scalar_lea.hbm %s944_s3, 32 }
 0x2a7   :  { %p661_p5 = scmp.ne.s32.totalorder %s944_s3, %s660_s15  ;;  %p664_p6 = scmp.lt.u32.totalorder %s660_s15, %s944_s3 }
 0x2a9   :  { %p666_p7 = pnand %p664_p6, %p661_p5 }
 0x2ab   :  { %669 = shalt.err (!%p666_p7)
}
 0x2ac   :  { %s677_s20 = smov 16   ;;  %s678_s21 = smov 1  }
 0x2ad   :  { %582 = dma.vmem_to_hbm [thread:$0]  %s577_s11, 32, %s944_s3, [#allocation3], %s677_s20, %s677_s20, %s678_s21  }
 0x2ae   :  { %670 = dma.done.wait [#allocation3], 32  }
 0x2af   :  { %671 = vsyncadd [#allocation3], 4294967264 }
 0x2b0   :  { %586 = vsyncpa [#allocation3], 1 }

</bundles_post_ra>
